<compile_context>
chip_gen: v5e
topology: v5e:2x2
jax: 0.10.0
libtpu: 0.0.40
codegen_flags: <defaults>
</compile_context>

<pallas_src>
from functools import partial

import numpy as np
import jax
import jax.numpy as jnp
from jax.experimental import pallas as pl
from jax.experimental.pallas import tpu as pltpu

# ---- stand-ins for `param.*` module constants (deterministic, in-script) ----
DX, DY, DT = 1.0, 1.0, 0.01
T0 = 300.0
POWER = 100.0
OMEGA = 0.05
XSOURCE, YSOURCE = 32.0, 64.0   # source center, in grid-index units


def heat_flux(Nx, Ny, dtype=jnp.float32):
    """Constant heat-source field; depends only on grid shape + constants."""
    # TODO(synk): exact HeatSource.heat_flux formula not available; using a
    # deterministic Gaussian laser spot Q = power * exp(-omega * r^2).
    ii = jnp.arange(Nx, dtype=dtype)[:, None]
    jj = jnp.arange(Ny, dtype=dtype)[None, :]
    r2 = (ii - XSOURCE) ** 2 + (jj - YSOURCE) ** 2
    return POWER * jnp.exp(-OMEGA * r2)


def _make_thermal_kernel(num_steps, Nx, Ny):
    inv_dx2 = 1.0 / (DX * DX)
    inv_dy2 = 1.0 / (DY * DY)
    same_spacing = (DX == DY)

    def kernel(params_ref, tp_ref, con_ref, q_ref, tnew_ref):
        # params_ref lives in SMEM: [cp, k_air, k_metal, rho]
        cp = jnp.abs(params_ref[0])
        k_air = jnp.abs(params_ref[1])
        k_metal = jnp.abs(params_ref[2])
        rho = jnp.abs(params_ref[3])

        T = tp_ref[...]          # (Nx, Ny) f32
        con = con_ref[...]       # (Nx, Ny) f32
        Q = q_ref[...]           # (Nx, Ny) f32, constant field

        # ---- loop-invariant fields (hoisted out of the time loop) ----
        # scale = dt/(rho*cp); kscale = k_field*scale; affine coefficients:
        #   same spacing:  T_new = a*T + b*sum4 + src
        #   general:       T_new = a*T + bx*(sumX) + by*(sumY) + src
        scale = DT / (rho * cp)                                  # scalar
        kscale = (con * k_metal + (1.0 - con) * k_air) * scale   # (Nx, Ny)
        src = Q * scale                                          # (Nx, Ny)
        if same_spacing:
            if inv_dx2 == 1.0:
                b = kscale                                       # no *1.0 mul
            else:
                b = kscale * inv_dx2
            a = 1.0 - 4.0 * b
        else:
            bx = kscale * inv_dx2
            by = kscale * inv_dy2
            a = 1.0 - 2.0 * (bx + by)

        # Boundary masks (loop-invariant).
        # Top/bot: only the first / last 8-row sublane block is patched.
        sub = jax.lax.broadcasted_iota(jnp.int32, (8, Ny), 0)
        top_mask8 = sub == 0          # global row 0 inside block [0:8)
        bot_mask8 = sub == 7          # global row Nx-1 inside block [Nx-8:Nx)
        # Left/right: lane 0 / lane Ny-1 lives in every vreg -> full-grid mask.
        col = jax.lax.broadcasted_iota(jnp.int32, (Nx, Ny), 1)
        left = col == 0
        right = col == Ny - 1
        t0 = jnp.float32(T0)

        def step(_, T):
            # Neighbor shifts on the XLU (roll); Dirichlet T0 fixes:
            #  - top/bot: single-vreg select + 8-aligned concatenate
            #  - left/right: full-grid select (unavoidable: every lane vreg)
            # roll(shift=1)[i] = T[i-1]; roll(shift=N-1)[i] = T[i+1].
            r_dn = pltpu.roll(T, shift=1, axis=0)        # T[i-1]
            r_up = pltpu.roll(T, shift=Nx - 1, axis=0)   # T[i+1]
            T_im1 = jnp.concatenate(
                [jnp.where(top_mask8, t0, r_dn[0:8, :]), r_dn[8:, :]], axis=0)
            T_ip1 = jnp.concatenate(
                [r_up[:Nx - 8, :],
                 jnp.where(bot_mask8, t0, r_up[Nx - 8:Nx, :])], axis=0)
            T_jm1 = jnp.where(left, t0, pltpu.roll(T, shift=1, axis=1))
            T_jp1 = jnp.where(right, t0, pltpu.roll(T, shift=Ny - 1, axis=1))

            if same_spacing:
                return a * T + b * ((T_im1 + T_ip1) + (T_jm1 + T_jp1)) + src
            else:
                return (a * T + bx * (T_im1 + T_ip1)
                        + by * (T_jm1 + T_jp1) + src)

        if num_steps == 1:
            T = step(0, T)
        else:
            # Steps are serially dependent -> unroll only removes loop
            # overhead; cap at 2 to stay inside the 64-vreg file (no spills).
            T = jax.lax.fori_loop(0, num_steps, step, T, unroll=2)
        tnew_ref[...] = T

    return kernel


@partial(jax.jit, static_argnames=("num_steps",))
def thermal_single_timestep(Tp, con, params, *, num_steps=1):
    """params: f32[4] = [cp, k_air, k_metal, rho] (trainable scalars).

    Returns (Tp_after_num_steps, Qflux).  num_steps=1 matches the PyTorch
    module's forward(); num_steps>1 fuses multiple explicit-Euler steps into
    a single pallas_call (T stays on-chip between steps) — prefer this path
    in hot loops, since a single 64x128 step is dispatch-bound.
    """
    Nx, Ny = Tp.shape
    Q = heat_flux(Nx, Ny)   # constant field, computed once outside the kernel
    kernel = _make_thermal_kernel(num_steps, Nx, Ny)
    Tp_new = pl.pallas_call(
        kernel,
        out_shape=jax.ShapeDtypeStruct((Nx, Ny), jnp.float32),
        in_specs=[
            pl.BlockSpec(memory_space=pltpu.MemorySpace.SMEM),   # params (4,)
            pl.BlockSpec(memory_space=pltpu.MemorySpace.VMEM),   # Tp
            pl.BlockSpec(memory_space=pltpu.MemorySpace.VMEM),   # con
            pl.BlockSpec(memory_space=pltpu.MemorySpace.VMEM),   # Q
        ],
        out_specs=pl.BlockSpec(memory_space=pltpu.MemorySpace.VMEM),
        # Alias Tp (input #1) to Tp_new (output #0): in-place Euler update
        # when the caller donates Tp; XLA inserts a copy otherwise.
        input_output_aliases={1: 0},
    )(params, Tp, con, Q)
    return Tp_new, Q


def reference_step(Tp, con, params):
    cp, k_air, k_metal, rho = [jnp.abs(params[i]) for i in range(4)]
    Tpad = jnp.pad(Tp, 1, constant_values=T0)
    lap = ((Tpad[:-2, 1:-1] + Tpad[2:, 1:-1] - 2 * Tp) / (DX * DX)
           + (Tpad[1:-1, :-2] + Tpad[1:-1, 2:] - 2 * Tp) / (DY * DY))
    Q = heat_flux(*Tp.shape)
    k_field = con * k_metal + (1.0 - con) * k_air
    Tnew = Tp + DT * (k_field * lap + Q) / (rho * cp)
    return Tnew, Q


if __name__ == "__main__":
    Nx, Ny = 64, 128

    key = jax.random.PRNGKey(0)
    k_cp, k_kair, k_kmetal, k_rho, k_tp, k_con = jax.random.split(key, 6)

    # Deterministic parameter init mirroring nn.Parameter(randn(1)*s + 0.1).
    cp_p = jax.random.normal(k_cp, ()) * 5.0 + 0.1
    k_air_p = jax.random.normal(k_kair, ()) * 2.0 + 0.1
    k_metal_p = jax.random.normal(k_kmetal, ()) * 5.0 + 0.1
    rho_p = jax.random.normal(k_rho, ()) * 5.0 + 0.1
    params = jnp.stack([cp_p, k_air_p, k_metal_p, rho_p]).astype(jnp.float32)

    Tp = (T0 + 50.0 * jax.random.normal(k_tp, (Nx, Ny))).astype(jnp.float32)
    con = jax.random.uniform(k_con, (Nx, Ny), dtype=jnp.float32)

    # --- single step: module's forward() semantics ---
    Tp_new, Qflux = thermal_single_timestep(Tp, con, params)
    jax.block_until_ready((Tp_new, Qflux))

    Tp_ref, Q_ref = reference_step(Tp, con, params)
    assert np.allclose(np.asarray(Tp_new), np.asarray(Tp_ref),
                       rtol=1e-4, atol=1e-3)
    assert np.allclose(np.asarray(Qflux), np.asarray(Q_ref),
                       rtol=1e-4, atol=1e-4)

    # --- fused multi-step path (perf: N steps per pallas_call) ---
    n_fused = 8
    Tp_multi, _ = thermal_single_timestep(Tp, con, params, num_steps=n_fused)
    jax.block_until_ready(Tp_multi)

    T_ref = Tp
    for _ in range(n_fused):
        T_ref, _ = reference_step(T_ref, con, params)
    assert np.allclose(np.asarray(Tp_multi), np.asarray(T_ref),
                       rtol=1e-3, atol=1e-2)

    print("KERNEL_OK")
</pallas_src>

<mosaic_0001>
module attributes {stable_mosaic.version = 11 : i64} {
  func.func @kernel(%arg0: memref<4xf32, #tpu.memory_space<smem>>, %arg1: memref<64x128xf32, #tpu.memory_space<vmem>>, %arg2: memref<64x128xf32, #tpu.memory_space<vmem>>, %arg3: memref<64x128xf32, #tpu.memory_space<vmem>>, %arg4: memref<64x128xf32, #tpu.memory_space<vmem>>) attributes {dimension_semantics = [], scalar_prefetch = 0 : i64, scratch_operands = 0 : i64, tpu.core_type = #tpu.core_type<tc>} {
    %c0 = arith.constant 0 : index
    %0 = memref.load %arg0[%c0] : memref<4xf32, #tpu.memory_space<smem>>
    %1 = math.absf %0 : f32
    %c1 = arith.constant 1 : index
    %2 = memref.load %arg0[%c1] : memref<4xf32, #tpu.memory_space<smem>>
    %3 = math.absf %2 : f32
    %c2 = arith.constant 2 : index
    %4 = memref.load %arg0[%c2] : memref<4xf32, #tpu.memory_space<smem>>
    %5 = math.absf %4 : f32
    %c3 = arith.constant 3 : index
    %6 = memref.load %arg0[%c3] : memref<4xf32, #tpu.memory_space<smem>>
    %7 = math.absf %6 : f32
    %c0_0 = arith.constant 0 : index
    %c0_1 = arith.constant 0 : index
    %8 = vector.load %arg1[%c0_0, %c0_1] : memref<64x128xf32, #tpu.memory_space<vmem>>, vector<64x128xf32>
    %c0_2 = arith.constant 0 : index
    %c0_3 = arith.constant 0 : index
    %9 = vector.load %arg2[%c0_2, %c0_3] : memref<64x128xf32, #tpu.memory_space<vmem>>, vector<64x128xf32>
    %c0_4 = arith.constant 0 : index
    %c0_5 = arith.constant 0 : index
    %10 = vector.load %arg3[%c0_4, %c0_5] : memref<64x128xf32, #tpu.memory_space<vmem>>, vector<64x128xf32>
    %11 = arith.mulf %7, %1 : f32
    %cst = arith.constant 0.00999999977 : f32
    %12 = arith.divf %cst, %11 : f32
    %13 = vector.broadcast %5 : f32 to vector<64x128xf32>
    %14 = arith.mulf %9, %13 : vector<64x128xf32>
    %cst_6 = arith.constant 1.000000e+00 : f32
    %15 = vector.broadcast %cst_6 : f32 to vector<64x128xf32>
    %16 = arith.subf %15, %9 : vector<64x128xf32>
    %17 = vector.broadcast %3 : f32 to vector<64x128xf32>
    %18 = arith.mulf %16, %17 : vector<64x128xf32>
    %19 = arith.addf %14, %18 : vector<64x128xf32>
    %20 = vector.broadcast %12 : f32 to vector<64x128xf32>
    %21 = arith.mulf %19, %20 : vector<64x128xf32>
    %22 = vector.broadcast %12 : f32 to vector<64x128xf32>
    %23 = arith.mulf %10, %22 : vector<64x128xf32>
    %cst_7 = arith.constant 4.000000e+00 : f32
    %24 = vector.broadcast %cst_7 : f32 to vector<64x128xf32>
    %25 = arith.mulf %24, %21 : vector<64x128xf32>
    %cst_8 = arith.constant 1.000000e+00 : f32
    %26 = vector.broadcast %cst_8 : f32 to vector<64x128xf32>
    %27 = arith.subf %26, %25 : vector<64x128xf32>
    %28 = tpu.iota {dimensions = array<i32: 0>} : vector<8x128xi32>
    %c0_i32 = arith.constant 0 : i32
    %29 = vector.broadcast %c0_i32 : i32 to vector<8x128xi32>
    %30 = arith.cmpi eq, %28, %29 : vector<8x128xi32>
    %c7_i32 = arith.constant 7 : i32
    %31 = vector.broadcast %c7_i32 : i32 to vector<8x128xi32>
    %32 = arith.cmpi eq, %28, %31 : vector<8x128xi32>
    %33 = tpu.iota {dimensions = array<i32: 1>} : vector<64x128xi32>
    %c0_i32_9 = arith.constant 0 : i32
    %34 = vector.broadcast %c0_i32_9 : i32 to vector<64x128xi32>
    %35 = arith.cmpi eq, %33, %34 : vector<64x128xi32>
    %c127_i32 = arith.constant 127 : i32
    %36 = vector.broadcast %c127_i32 : i32 to vector<64x128xi32>
    %37 = arith.cmpi eq, %33, %36 : vector<64x128xi32>
    %c1_i32 = arith.constant 1 : i32
    %38 = tpu.dynamic_rotate %8 by %c1_i32 dim 0 : vector<64x128xf32>, i32 -> vector<64x128xf32>
    %c63_i32 = arith.constant 63 : i32
    %39 = tpu.dynamic_rotate %8 by %c63_i32 dim 0 : vector<64x128xf32>, i32 -> vector<64x128xf32>
    %40 = vector.extract_strided_slice %38 {offsets = [0, 0], sizes = [8, 128], strides = [1, 1]} : vector<64x128xf32> to vector<8x128xf32>
    %cst_10 = arith.constant 3.000000e+02 : f32
    %41 = vector.broadcast %cst_10 : f32 to vector<8x128xf32>
    %42 = arith.select %30, %41, %40 : vector<8x128xi1>, vector<8x128xf32>
    %43 = vector.extract_strided_slice %38 {offsets = [8, 0], sizes = [56, 128], strides = [1, 1]} : vector<64x128xf32> to vector<56x128xf32>
    %44 = tpu.concatenate %42, %43 in 0 : vector<8x128xf32>, vector<56x128xf32> -> vector<64x128xf32>
    %45 = vector.extract_strided_slice %39 {offsets = [0, 0], sizes = [56, 128], strides = [1, 1]} : vector<64x128xf32> to vector<56x128xf32>
    %46 = vector.extract_strided_slice %39 {offsets = [56, 0], sizes = [8, 128], strides = [1, 1]} : vector<64x128xf32> to vector<8x128xf32>
    %cst_11 = arith.constant 3.000000e+02 : f32
    %47 = vector.broadcast %cst_11 : f32 to vector<8x128xf32>
    %48 = arith.select %32, %47, %46 : vector<8x128xi1>, vector<8x128xf32>
    %49 = tpu.concatenate %45, %48 in 0 : vector<56x128xf32>, vector<8x128xf32> -> vector<64x128xf32>
    %c1_i32_12 = arith.constant 1 : i32
    %50 = tpu.dynamic_rotate %8 by %c1_i32_12 dim 1 : vector<64x128xf32>, i32 -> vector<64x128xf32>
    %cst_13 = arith.constant 3.000000e+02 : f32
    %51 = vector.broadcast %cst_13 : f32 to vector<64x128xf32>
    %52 = arith.select %35, %51, %50 : vector<64x128xi1>, vector<64x128xf32>
    %c127_i32_14 = arith.constant 127 : i32
    %53 = tpu.dynamic_rotate %8 by %c127_i32_14 dim 1 : vector<64x128xf32>, i32 -> vector<64x128xf32>
    %cst_15 = arith.constant 3.000000e+02 : f32
    %54 = vector.broadcast %cst_15 : f32 to vector<64x128xf32>
    %55 = arith.select %37, %54, %53 : vector<64x128xi1>, vector<64x128xf32>
    %56 = arith.mulf %27, %8 : vector<64x128xf32>
    %57 = arith.addf %44, %49 : vector<64x128xf32>
    %58 = arith.addf %52, %55 : vector<64x128xf32>
    %59 = arith.addf %57, %58 : vector<64x128xf32>
    %60 = arith.mulf %21, %59 : vector<64x128xf32>
    %61 = arith.addf %56, %60 : vector<64x128xf32>
    %62 = arith.addf %61, %23 : vector<64x128xf32>
    %c0_16 = arith.constant 0 : index
    %c0_17 = arith.constant 0 : index
    %63 = vector.load %arg4[%c0_16, %c0_17] : memref<64x128xf32, #tpu.memory_space<vmem>>, vector<64x128xf32>
    tpu.vector_store %arg4[%c0_16, %c0_17], %62 {strides = array<i32>} : memref<64x128xf32, #tpu.memory_space<vmem>>, vector<64x128xf32>,
    return
  }
}

</mosaic_0001>

<bundles_post_ra>
// kernel: thermal_single_timestep.1
= control target key start
LH: loop header
LB: loop body
LE: loop exit
PB: predicated region body
PF: predicated region fallthrough
CT: control target
= control target key end

     0   :  { %9 = vsyncpa [#allocation3], 0  ;;  %s332_s18 = smov [#allocation2]   ;;  %s700_s0 = inlined_call_operand.vmem [shape: f32[4], index: 0, kind: input, shape index: {}]   ;;  %s701_s1 = inlined_call_operand.vmem [shape: f32[64,128], index: 1, kind: input, shape index: {}, may-alias: {1,4}]   ;;  %s702_s2 = inlined_call_operand.vmem [shape: f32[64,128], index: 2, kind: input, shape index: {}]   ;;  %s703_s3 = inlined_call_operand.vmem [shape: f32[64,128], index: 3, kind: input, shape index: {}]   ;;  %s704_s4 = inlined_call_operand.vmem [shape: f32[64,128], index: 4, kind: output, shape index: {}, may-alias: {1,4}]  }
   0x1   :  { %s15_s17 = sshll.u32 %s700_s0, 4  ;;  %s16_s17 = int_to_ptr.vmem [resolvable:$true] %s15_s17 }
   0x2   :  { %18 = dma.vmem_to_smem %s16_s17, 16, %s332_s18, [#allocation3]  }
   0x3   :  { %330 = dma.done.wait [#allocation3], 16  }
   0x4   :  { %331 = vsyncadd [#allocation3], 4294967280 }
   0x5   :  { %29 = sfence }
   0x6   :  { %v366_v0 = vld [vmem:[%s701_s1 + $0x10] sm:$0xff]  ;;  %v371_v1 = vld [vmem:[%s701_s1] sm:$0xff]  ;;  %s333_s0 = smov 1   ;;  %s30_s25 = sld [smem:[#allocation2]]  ;;  %v384_v3 = vld [vmem:[%s701_s1 + $0x18] sm:$0xff]  ;;  %v147_v24 = vlaneseq }
   0x7   :  { %v376_v2 = vld [vmem:[%s701_s1 + $0x20] sm:$0xff]  ;;  %195 = vrot.lane.b32.xlu1 %v366_v0, %s333_s0  ;;  %191 = vrot.lane.b32.xlu0 %v371_v1, %s333_s0  ;;  %s310_s26 = sld [smem:[#allocation2 + $0x3]]  ;;  %v389_v4 = vld [vmem:[%s701_s1 + $0x8] sm:$0xff]  ;;  %s334_s14 = smov 127   ;;  %v155_v34 = vrot.slane %v371_v1, 7  ;;  %v172_v38 = vrot.slane %v371_v1, 1 }
   0x8   :  { %199 = vrot.lane.b32.xlu2 %v376_v2, %s333_s0  ;;  %v394_v5 = vld [vmem:[%s701_s1 + $0x28] sm:$0xff]  ;;  %v402_v7 = vld [vmem:[%s701_s1 + $0x38] sm:$0xff]  ;;  %v407_v8 = vld [vmem:[%s701_s1 + $0x30] sm:$0xff]  ;;  %s308_s1 = sld [smem:[#allocation2 + $0x1]]  ;;  %v435_v29 = vshrl.u32 %v147_v24, 7  ;;  %v442_v35 = vand.u32 127, %v147_v24 }
   0x9   :  { %s309_s15 = sld [smem:[#allocation2 + $0x2]]  ;;  %v46_v19 = vld [vmem:[%s702_s2] sm:$0xff]  ;;  %v49_v28 = vld [vmem:[%s702_s2 + $0x18] sm:$0xff]  ;;  %v162_v33 = vrot.slane %v402_v7, 7  ;;  %v173_v37 = vrot.slane %v389_v4, 1  ;;  %v52_v43 = vld [vmem:[%s702_s2 + $0x30] sm:$0xff] }
   0xa   :  { %v89_v21 = vsub.f32 1.0, %v46_v19  ;;  %v92_v32 = vsub.f32 1.0, %v49_v28  ;;  %vm163_vm4 = vcmp.lt.s32.totalorder %v435_v29, 1  ;;  %vm149_vm5 = vcmp.eq.s32.totalorder %v435_v29, 0  ;;  %v48_v45 = vld [vmem:[%s702_s2 + $0x10] sm:$0xff]  ;;  %v47_v50 = vld [vmem:[%s702_s2 + $0x8] sm:$0xff] }
   0xb   :  { %vm180_vm6 = vcmp.lt.s32.totalorder %v435_v29, 7  ;;  %v171_v42 = vsel %vm163_vm4, %v162_v33, %v155_v34  ;;  %vm154_vm7 = vcmp.eq.s32.totalorder %v442_v35, 127  ;;  %v95_v49 = vsub.f32 1.0, %v52_v43 }
   0xc   :  { %s31_s7 = sand.u32 2147483647, %s30_s25  ;;  %v187_v46 = vsel %vm180_vm6, %v172_v38, %v173_v37  ;;  %v189_v47 = vsel %vm149_vm5, 300.0, %v171_v42  ;;  %vm153_vm8 = vcmp.eq.s32.totalorder %v442_v35, 0  ;;  %v91_v51 = vsub.f32 1.0, %v48_v45 }
   0xd   :  { %s37_s8 = sand.u32 2147483647, %s310_s26  ;;  %v247_v54 = vadd.f32 %v189_v47, %v187_v46  ;;  %v90_v55 = vsub.f32 1.0, %v47_v50  ;;  %v157_v58 = vrot.slane %v366_v0, 7  ;;  %v158_v63 = vrot.slane %v384_v3, 7 }
   0xe   :  { %s62_s9 = smul.f32 %s37_s8, %s31_s7  ;;  %s33_s18 = sand.u32 2147483647, %s308_s1  ;;  %v179_v42 = vrot.slane %v402_v7, 1  ;;  %vm150_vm9 = vcmp.eq.s32.totalorder %v435_v29, 7 }
   0xf   :  { %197 = vrot.lane.b32.xlu1 %v384_v3, %s333_s0  ;;  %193 = vrot.lane.b32.xlu0 %v389_v4, %s333_s0  ;;  %s35_s19 = sand.u32 2147483647, %s309_s15  ;;  %v426_v23 = vstv %s33_s18 }
  0x10   :  { %201 = vrot.lane.b32.xlu2 %v394_v5, %s333_s0  ;;  %v63_v6 = vstv %s62_s9  ;;  %v424_v22 = vstv %s35_s19  ;;  %v98_v26 = vmul.f32 %v426_v23, %v89_v21  ;;  %v101_v40 = vmul.f32 %v426_v23, %v92_v32 }
  0x11   :  { %316 = vrcp.f32 %v63_v6  ;;  %v75_v11 = vand.u32 2147483648, %v63_v6  ;;  %vm69_vm0 = vweird.f32 %v63_v6  ;;  %v73_v13 = vand.u32 2147483647, %v63_v6 }
  0x12   :  { %v81_v25 = vmul.f32 %v424_v22, %v46_v19  ;;  %v84_v39 = vmul.f32 %v424_v22, %v49_v28  ;;  %v87_v60 = vmul.f32 %v424_v22, %v52_v43  ;;  %v104_v61 = vmul.f32 %v426_v23, %v95_v49  ;;  %v51_v49 = vld [vmem:[%s702_s2 + $0x28] sm:$0xff] }
  0x13   :  { %v76_v15 = vor.u32 1.1754944e-38, %v75_v11  ;;  %vm74_vm3 = vcmp.eq.f32.partialorder %v73_v13, 8.507059e+37  ;;  %v83_v13 = vmul.f32 %v424_v22, %v48_v45  ;;  %v161_v32 = vrot.slane %v407_v8, 7 }
  0x14   :  { %v106_v30 = vadd.f32 %v98_v26, %v81_v25  ;;  %v109_v48 = vadd.f32 %v101_v40, %v84_v39  ;;  %v112_v21 = vadd.f32 %v104_v61, %v87_v60  ;;  %v168_v25 = vsel %vm163_vm4, %v157_v58, %v158_v63 }
  0x17   :  { %205 = vrot.lane.b32.xlu1 %v402_v7, %s333_s0  ;;  %203 = vrot.lane.b32.xlu0 %v407_v8, %s333_s0  ;;  %v317_v9 = vpop.eup %316 }
  0x18   :  { %215 = vrot.lane.b32.xlu2 %v371_v1, %s334_s14  ;;  %v65_v10 = vmul.f32 %v317_v9, %v63_v6  ;;  %vm70_vm1 = vweird.f32 %v317_v9  ;;  %v175_v6 = vrot.slane %v384_v3, 1 }
  0x19   :  { %vm71_vm2 = vmor %vm69_vm0, %vm70_vm1 }
  0x1a   :  { %v66_v12 = vsub.f32 1.0, %v65_v10  ;;  %v54_v10 = vld [vmem:[%s703_s3] sm:$0xff] }
  0x1c   :  { %v67_v14 = vmul.f32 %v317_v9, %v66_v12 }
  0x1e   :  { %v68_v16 = vadd.f32 %v317_v9, %v67_v14  ;;  %v100_v14 = vmul.f32 %v426_v23, %v91_v51  ;;  %v50_v51 = vld [vmem:[%s702_s2 + $0x20] sm:$0xff] }
  0x1f   :  { %219 = vrot.lane.b32.xlu1 %v366_v0, %s334_s14  ;;  %217 = vrot.lane.b32.xlu0 %v389_v4, %s334_s14 }
  0x20   :  { %221 = vrot.lane.b32.xlu2 %v384_v3, %s334_s14  ;;  %v72_v17 = vsel %vm71_vm2, %v317_v9, %v68_v16  ;;  %v176_v9 = vrot.slane %v376_v2, 1  ;;  %v99_v16 = vmul.f32 %v426_v23, %v90_v55  ;;  %v108_v39 = vadd.f32 %v100_v14, %v83_v13 }
  0x21   :  { %v77_v18 = vsel %vm74_vm3, %v76_v15, %v72_v17  ;;  %v82_v15 = vmul.f32 %v424_v22, %v47_v50  ;;  %v93_v14 = vsub.f32 1.0, %v50_v51 }
  0x22   :  { %311 = vpush %v77_v18  ;;  %v184_v26 = vsel %vm180_vm6, %v175_v6, %v176_v9 }
  0x23   :  { %v107_v43 = vadd.f32 %v99_v16, %v82_v15  ;;  %v250_v46 = vadd.f32 %v184_v26, %v168_v25  ;;  %v156_v16 = vrot.slane %v389_v4, 7  ;;  %v86_v26 = vmul.f32 %v424_v22, %v51_v49 }
  0x27   :  { %225 = vrot.lane.b32.xlu1 %v394_v5, %s334_s14  ;;  %223 = vrot.lane.b32.xlu0 %v376_v2, %s334_s14 }
  0x28   :  { %227 = vrot.lane.b32.xlu2 %v407_v8, %s334_s14 }
  0x2f   :  { %229 = vrot.lane.b32.xlu0 %v402_v7, %s334_s14 }
  0x53   :  { %s312_s20 = spop %311 }
  0x54   :  { %s79_s21 = smul.f32 0.01, %s312_s20 }
  0x56   :  { %v437_v31 = vstv %s79_s21 }
  0x57   :  { %v115_v36 = vmul.f32 %v437_v31, %v106_v30  ;;  %v118_v59 = vmul.f32 %v437_v31, %v109_v48  ;;  %v123_v24 = vmul.f32 %v437_v31, %v54_v10  ;;  %v160_v30 = vrot.slane %v394_v5, 7 }
  0x58   :  { %v529_v55 = vmul.f32 %v437_v31, %v108_v39  ;;  %v544_v61 = vmul.f32 %v437_v31, %v107_v43 }
  0x59   :  { %v131_v44 = vmul.f32 4.0, %v115_v36  ;;  %v134_v19 = vmul.f32 4.0, %v118_v59 }
  0x5a   :  { %v132_v25 = vmul.f32 4.0, %v544_v61 }
  0x5b   :  { %v139_v53 = vsub.f32 1.0, %v131_v44  ;;  %v142_v47 = vsub.f32 1.0, %v134_v19  ;;  %v133_v19 = vmul.f32 4.0, %v529_v55 }
  0x5d   :  { %v239_v17 = vmul.f32 %v139_v53, %v371_v1  ;;  %v57_v53 = vld [vmem:[%s703_s3 + $0x18] sm:$0xff]  ;;  %v242_v10 = vmul.f32 %v142_v47, %v384_v3  ;;  %v169_v47 = vsel %vm163_vm4, %v156_v16, %v157_v58 }
  0x5e   :  { %v126_v15 = vmul.f32 %v437_v31, %v57_v53 }
  0x62   :  { %v422_v20 = vpop.permute.xlu2 %199 }
  0x63   :  { %v211_v3 = vsel %vm153_vm8, 300.0, %v422_v20 }
  0x6a   :  { %v430_v27 = vpop.permute.xlu2 %201 }
  0x72   :  { %v216_v41 = vpop.permute.xlu2 %215 }
  0x73   :  { %v231_v52 = vsel %vm154_vm7, 300.0, %v216_v41  ;;  %v178_v41 = vrot.slane %v407_v8, 1 }
  0x75   :  { %v181_v60 = vsel %vm180_vm6, %v178_v41, %v179_v42 }
  0x79   :  { %v476_v56 = vpop.permute.xlu1 %195  ;;  %v192_v57 = vpop.permute.xlu0 %191 }
  0x7a   :  { %v207_v62 = vsel %vm153_vm8, 300.0, %v192_v57  ;;  %v222_v12 = vpop.permute.xlu2 %221  ;;  %v165_v57 = vsel %vm163_vm4, %v160_v30, %v161_v32 }
  0x7b   :  { %v255_v11 = vadd.f32 %v231_v52, %v207_v62  ;;  %v234_v40 = vsel %vm154_vm7, 300.0, %v222_v12  ;;  %v94_v62 = vsub.f32 1.0, %v51_v49  ;;  %v53_v49 = vld [vmem:[%s702_s2 + $0x38] sm:$0xff] }
  0x7d   :  { %v263_v18 = vadd.f32 %v255_v11, %v247_v54 }
  0x7f   :  { %v271_v28 = vmul.f32 %v263_v18, %v115_v36  ;;  %v121_v36 = vmul.f32 %v437_v31, %v112_v21  ;;  %v253_v18 = vadd.f32 %v181_v60, %v165_v57  ;;  %v174_v21 = vrot.slane %v366_v0, 1 }
  0x80   :  { %v140_v57 = vsub.f32 1.0, %v132_v25  ;;  %v170_v60 = vsel %vm163_vm4, %v155_v34, %v156_v16  ;;  %v177_v16 = vrot.slane %v394_v5, 1 }
  0x81   :  { %v279_v44 = vadd.f32 %v271_v28, %v239_v17  ;;  %v198_v45 = vpop.permute.xlu1 %197  ;;  %v514_v48 = vpop.permute.xlu0 %193  ;;  %v137_v13 = vmul.f32 4.0, %v121_v36  ;;  %v103_v28 = vmul.f32 %v426_v23, %v94_v62  ;;  %v185_v53 = vsel %vm180_vm6, %v174_v21, %v175_v6 }
  0x82   :  { %v210_v50 = vsel %vm153_vm8, 300.0, %v198_v45  ;;  %v228_v12 = vpop.permute.xlu2 %227  ;;  %v102_v45 = vmul.f32 %v426_v23, %v93_v14  ;;  %v186_v58 = vsel %vm180_vm6, %v173_v37, %v174_v21  ;;  %v249_v14 = vadd.f32 %v185_v53, %v169_v47 }
  0x83   :  { %v287_v52 = vadd.f32 %v279_v44, %v123_v24  ;;  %v258_v54 = vadd.f32 %v234_v40, %v210_v50  ;;  %v237_v24 = vsel %vm154_vm7, 300.0, %v228_v12  ;;  %v145_v44 = vsub.f32 1.0, %v137_v13 }
  0x84   :  { %v111_v62 = vadd.f32 %v103_v28, %v86_v26  ;;  %v96_v12 = vsub.f32 1.0, %v53_v49  ;;  %v240_v34 = vmul.f32 %v140_v57, %v389_v4  ;;  %v88_v28 = vmul.f32 %v424_v22, %v53_v49 }
  0x85   :  { %295 = vst [vmem:[%s704_s4] sm:$0xff] %v287_v52  ;;  %v266_v11 = vadd.f32 %v258_v54, %v250_v46  ;;  %v60_v52 = vld [vmem:[%s703_s3 + $0x30] sm:$0xff]  ;;  %v141_v54 = vsub.f32 1.0, %v133_v19 }
  0x86   :  { %v129_v13 = vmul.f32 %v437_v31, %v60_v52  ;;  %v120_v21 = vmul.f32 %v437_v31, %v111_v62 }
  0x87   :  { %v274_v17 = vmul.f32 %v266_v11, %v118_v59  ;;  %v85_v59 = vmul.f32 %v424_v22, %v50_v51  ;;  %v241_v19 = vmul.f32 %v141_v54, %v366_v0  ;;  %v208_v0 = vsel %vm153_vm8, 300.0, %v514_v48 }
  0x88   :  { %v182_v48 = vsel %vm180_vm6, %v177_v16, %v178_v41 }
  0x89   :  { %v282_v39 = vadd.f32 %v274_v17, %v242_v10  ;;  %v559_v40 = vpop.permute.xlu1 %205  ;;  %v204_v43 = vpop.permute.xlu0 %203  ;;  %v245_v10 = vmul.f32 %v145_v44, %v407_v8  ;;  %v110_v11 = vadd.f32 %v102_v45, %v85_v59  ;;  %v159_v17 = vrot.slane %v376_v2, 7 }
  0x8a   :  { %v213_v46 = vsel %vm153_vm8, 300.0, %v204_v43  ;;  %v214_v8 = vsel %vm153_vm8, 300.0, %v559_v40  ;;  %v61_v40 = vld [vmem:[%s703_s3 + $0x38] sm:$0xff] }
  0x8b   :  { %v290_v50 = vadd.f32 %v282_v39, %v126_v15  ;;  %v261_v51 = vadd.f32 %v237_v24, %v213_v46  ;;  %v248_v15 = vadd.f32 %v186_v58, %v170_v60  ;;  %v119_v26 = vmul.f32 %v437_v31, %v110_v11 }
  0x8c   :  { %v209_v39 = vsel %vm153_vm8, 300.0, %v476_v56  ;;  %v166_v22 = vsel %vm163_vm4, %v159_v17, %v160_v30  ;;  %v55_v56 = vld [vmem:[%s703_s3 + $0x8] sm:$0xff]  ;;  %v136_v46 = vmul.f32 4.0, %v120_v21  ;;  %v167_v47 = vsel %vm163_vm4, %v158_v63, %v159_v17 }
  0x8d   :  { %298 = vst [vmem:[%s704_s4 + $0x18] sm:$0xff] %v290_v50  ;;  %v269_v6 = vadd.f32 %v261_v51, %v253_v18  ;;  %v183_v30 = vsel %vm180_vm6, %v176_v9, %v177_v16  ;;  %v135_v52 = vmul.f32 4.0, %v119_v26  ;;  %v124_v53 = vmul.f32 %v437_v31, %v55_v56  ;;  %v59_v17 = vld [vmem:[%s703_s3 + $0x28] sm:$0xff] }
  0x8e   :  { %v212_v58 = vsel %vm153_vm8, 300.0, %v430_v27  ;;  %v252_v54 = vadd.f32 %v182_v48, %v166_v22  ;;  %v144_v57 = vsub.f32 1.0, %v136_v46  ;;  %v251_v60 = vadd.f32 %v183_v30, %v167_v47 }
  0x8f   :  { %v277_v37 = vmul.f32 %v269_v6, %v121_v36  ;;  %v105_v36 = vmul.f32 %v426_v23, %v96_v12  ;;  %v56_v23 = vld [vmem:[%s703_s3 + $0x10] sm:$0xff]  ;;  %v143_v20 = vsub.f32 1.0, %v135_v52  ;;  %v188_v27 = vsel %vm180_vm6, %v179_v42, %v172_v38 }
  0x90   :  { %v125_v41 = vmul.f32 %v437_v31, %v56_v23 }
  0x91   :  { %v285_v24 = vadd.f32 %v277_v37, %v245_v10  ;;  %v220_v25 = vpop.permute.xlu1 %219  ;;  %v218_v18 = vpop.permute.xlu0 %217  ;;  %v113_v51 = vadd.f32 %v105_v36, %v88_v28  ;;  %v243_v38 = vmul.f32 %v143_v20, %v376_v2 }
  0x92   :  { %v233_v4 = vsel %vm154_vm7, 300.0, %v220_v25  ;;  %v232_v43 = vsel %vm154_vm7, 300.0, %v218_v18  ;;  %v128_v25 = vmul.f32 %v437_v31, %v59_v17 }
  0x93   :  { %v293_v44 = vadd.f32 %v285_v24, %v129_v13  ;;  %v257_v59 = vadd.f32 %v233_v4, %v209_v39  ;;  %v256_v45 = vadd.f32 %v232_v43, %v208_v0  ;;  %v122_v12 = vmul.f32 %v437_v31, %v113_v51 }
  0x94   :  { %v190_v24 = vsel %vm150_vm9, 300.0, %v188_v27 }
  0x95   :  { %301 = vst [vmem:[%s704_s4 + $0x30] sm:$0xff] %v293_v44  ;;  %v265_v49 = vadd.f32 %v257_v59, %v249_v14  ;;  %v264_v50 = vadd.f32 %v256_v45, %v248_v15  ;;  %v138_v16 = vmul.f32 4.0, %v122_v12  ;;  %v130_v59 = vmul.f32 %v437_v31, %v61_v40 }
  0x97   :  { %v273_v63 = vmul.f32 %v265_v49, %v529_v55  ;;  %v272_v9 = vmul.f32 %v264_v50, %v544_v61  ;;  %v146_v4 = vsub.f32 1.0, %v138_v16 }
  0x99   :  { %v281_v62 = vadd.f32 %v273_v63, %v241_v19  ;;  %v280_v10 = vadd.f32 %v272_v9, %v240_v34  ;;  %v226_v6 = vpop.permute.xlu1 %225  ;;  %v224_v11 = vpop.permute.xlu0 %223  ;;  %v244_v19 = vmul.f32 %v144_v57, %v394_v5  ;;  %v58_v34 = vld [vmem:[%s703_s3 + $0x20] sm:$0xff]  ;;  %v164_v5 = vsel %vm163_vm4, %v161_v32, %v162_v33 }
  0x9a   :  { %v236_v55 = vsel %vm154_vm7, 300.0, %v226_v6  ;;  %v235_v61 = vsel %vm154_vm7, 300.0, %v224_v11  ;;  %v127_v2 = vmul.f32 %v437_v31, %v58_v34  ;;  %v254_v43 = vadd.f32 %v190_v24, %v164_v5 }
  0x9b   :  { %v289_v13 = vadd.f32 %v281_v62, %v125_v41  ;;  %v288_v37 = vadd.f32 %v280_v10, %v124_v53  ;;  %v260_v14 = vadd.f32 %v236_v55, %v212_v58  ;;  %v259_v15 = vadd.f32 %v235_v61, %v211_v3 }
  0x9d   :  { %297 = vst [vmem:[%s704_s4 + $0x10] sm:$0xff] %v289_v13  ;;  %v268_v1 = vadd.f32 %v260_v14, %v252_v54  ;;  %v267_v42 = vadd.f32 %v259_v15, %v251_v60 }
  0x9e   :  { %296 = vst [vmem:[%s704_s4 + $0x8] sm:$0xff] %v288_v37 }
  0x9f   :  { %v276_v18 = vmul.f32 %v268_v1, %v120_v21  ;;  %v275_v28 = vmul.f32 %v267_v42, %v119_v26  ;;  %v246_v21 = vmul.f32 %v146_v4, %v402_v7 }
  0xa1   :  { %v284_v36 = vadd.f32 %v276_v18, %v244_v19  ;;  %v283_v39 = vadd.f32 %v275_v28, %v243_v38  ;;  %v230_v0 = vpop.permute.xlu0 %229 }
  0xa2   :  { %v238_v33 = vsel %vm154_vm7, 300.0, %v230_v0 }
  0xa3   :  { %v292_v29 = vadd.f32 %v284_v36, %v128_v25  ;;  %v291_v32 = vadd.f32 %v283_v39, %v127_v2  ;;  %v262_v44 = vadd.f32 %v238_v33, %v214_v8 }
  0xa5   :  { %300 = vst [vmem:[%s704_s4 + $0x28] sm:$0xff] %v292_v29  ;;  %v270_v26 = vadd.f32 %v262_v44, %v254_v43 }
  0xa6   :  { %299 = vst [vmem:[%s704_s4 + $0x20] sm:$0xff] %v291_v32 }
  0xa7   :  { %v278_v35 = vmul.f32 %v270_v26, %v122_v12 }
  0xa9   :  { %v286_v45 = vadd.f32 %v278_v35, %v246_v21 }
  0xab   :  { %v294_v22 = vadd.f32 %v286_v45, %v130_v59 }
  0xad   :  { %302 = vst [vmem:[%s704_s4 + $0x38] sm:$0xff] %v294_v22 }
  0xae   :  { %307 = vsyncpa [#allocation3], 1 }

</bundles_post_ra>
